<compile_context>
chip_gen: v6e
topology: v6e:2x2x1
jax: 0.10.0
libtpu: 0.0.40
codegen_flags: <defaults>
</compile_context>

<pallas_src>
import functools

import jax
import jax.numpy as jnp
from jax.experimental import pallas as pl
from jax.experimental.pallas import tpu as pltpu

EPS = 1e-5


def _mlp_kernel(x_ref, w1t_ref, w2t_ref, gamma_ref, beta_ref, o_ref, *, use_bn):
    # x:     (B, D_in)  f32   (unpadded; cast to bf16 in-register)
    # w1t:   (D_in, Hp) bf16  (= W1.T, hidden columns zero-padded to Hp lanes)
    # w2t:   (Hp, Op)   bf16  (= W2.T, zero-padded; padded rows are 0)
    # gamma/beta: (1, Hp) f32 (zero-padded -> padded hidden columns stay exactly 0 through BN)
    # o:     (B, Op)    f32   (lane-dense store; real columns are [:O])
    x = x_ref[...].astype(jnp.bfloat16)
    h = jnp.dot(x, w1t_ref[...], preferred_element_type=jnp.float32)  # (B, Hp) f32

    if use_bn:
        # BatchNorm1d, training mode (biased batch statistics), single reduction pass in f32.
        inv_b = 1.0 / h.shape[0]
        mean = jnp.sum(h, axis=0, keepdims=True) * inv_b
        mean_sq = jnp.sum(h * h, axis=0, keepdims=True) * inv_b
        # Clamp: E[h^2] - mean^2 can cancel slightly negative in f32; rsqrt would then NaN.
        var = jnp.maximum(mean_sq - mean * mean, 0.0)
        scale = gamma_ref[...] * jax.lax.rsqrt(var + EPS)   # rsqrt -> EUP slot (free-ish)
        shift = beta_ref[...] - mean * scale
        h = h * scale + shift                                # one FMA per element

    h = jnp.maximum(h, 0.0)  # ReLU

    o_ref[...] = jnp.dot(h.astype(jnp.bfloat16), w2t_ref[...],
                         preferred_element_type=jnp.float32).astype(o_ref.dtype)


def _round_up(n, m):
    return ((n + m - 1) // m) * m


def prepare_params(w1, w2, gamma, beta):
    """ONE-TIME (parameter-load-time) preprocessing: transpose, bf16 cast, lane-dense padding.

    w1: (H, D_in), w2: (O, H), gamma/beta: (H,).  Returns padded device arrays; the padded
    columns/rows are exactly zero so padded features stay identically 0 through BN and ReLU.
    """
    H, D_in = w1.shape
    O = w2.shape[0]
    Hp = _round_up(H, 128)
    Op = _round_up(O, 128)
    w1t = jnp.zeros((D_in, Hp), jnp.bfloat16).at[:, :H].set(w1.T.astype(jnp.bfloat16))
    w2t = jnp.zeros((Hp, Op), jnp.bfloat16).at[:H, :O].set(w2.T.astype(jnp.bfloat16))
    gamma_p = jnp.zeros((1, Hp), jnp.float32).at[:, :H].set(gamma.astype(jnp.float32)[None, :])
    beta_p = jnp.zeros((1, Hp), jnp.float32).at[:, :H].set(beta.astype(jnp.float32)[None, :])
    return {"w1t": w1t, "w2t": w2t, "gamma": gamma_p, "beta": beta_p, "out_dim": O}


def mlp_forward(x, params):
    """x: (B, D_in) f32; params from prepare_params().  Returns (B, O) f32."""
    B, _ = x.shape
    w1t, w2t = params["w1t"], params["w2t"]
    gamma_p, beta_p = params["gamma"], params["beta"]
    O = params["out_dim"]
    Op = w2t.shape[1]
    use_bn = B > 1  # mirrors the PyTorch `if h.shape[0] == 1` branch (shapes are static)

    # TODO(synk): production-scale plan (B, H, O in the hundreds+):
    #   * grid = (B//tm, O//tn, H//tk) with the batch axis marked "parallel" (uses v7x's 2nd
    #     TensorCore) and the reduction axis last / "arbitrary"; f32 VMEM accumulator (P3).
    #   * tm/tn = 256 (tk >= 256) on v6e/v7x (2x256^2 MXU), 128 tiles on v5e (4x128^2).
    #   * weight residency: W1+W2 bf16 can stay VMEM-resident on v5e/v6e (128 MiB) up to ~
    #     2x32 MiB; on v7x (64 MiB) stream H/O weight tiles with pipeline_mode=pl.Buffered(2-3)
    #     and cap vmem_limit_bytes at ~40-48 MiB.  Optionally fp8 weights/activations on v7x.
    #   * BatchNorm must stay full-batch: two-pass BN — pass 1 accumulates per-feature
    #     sum / sum-of-squares into VMEM scratch across batch tiles (pl.when-gated init/finalize),
    #     pass 2 applies scale/shift + ReLU + the second matmul.  Never compute stats per tile.
    # At these toy shapes the whole problem fits one VMEM block, so the call is gridless; note
    # that at B=8 the kernel is launch/overhead-bound (~6% MXU row utilization) by construction.
    vmem_spec = pl.BlockSpec(memory_space=pltpu.MemorySpace.VMEM)
    out_p = pl.pallas_call(
        functools.partial(_mlp_kernel, use_bn=use_bn),
        out_shape=jax.ShapeDtypeStruct((B, Op), jnp.float32),
        in_specs=[vmem_spec, vmem_spec, vmem_spec, vmem_spec, vmem_spec],
        out_specs=vmem_spec,
        compiler_params=pltpu.CompilerParams(vmem_limit_bytes=16 * 1024 * 1024),
    )(x.astype(jnp.float32), w1t, w2t, gamma_p, beta_p)

    return out_p[:, :O]


def _xavier_uniform(key, out_features, in_features, dtype=jnp.float32):
    bound = (6.0 / (in_features + out_features)) ** 0.5
    return jax.random.uniform(key, (out_features, in_features), dtype=dtype,
                              minval=-bound, maxval=bound)


def _reference_matched(x, w1, w2, gamma, beta):
    # Matches the kernel's numerics: bf16 matmul operands, f32 accumulation, f32 BN math.
    h = jnp.dot(x.astype(jnp.bfloat16), w1.T.astype(jnp.bfloat16),
                preferred_element_type=jnp.float32)
    if x.shape[0] > 1:
        mean = jnp.mean(h, axis=0, keepdims=True)
        var = jnp.maximum(jnp.mean(h * h, axis=0, keepdims=True) - mean * mean, 0.0)
        h = (h - mean) * jax.lax.rsqrt(var + EPS) * gamma[None, :] + beta[None, :]
    h = jnp.maximum(h, 0.0)
    return jnp.dot(h.astype(jnp.bfloat16), w2.T.astype(jnp.bfloat16),
                   preferred_element_type=jnp.float32)


def _reference_f32(x, w1, w2, gamma, beta):
    # Pure f32 reference mirroring the PyTorch module's forward in default train() mode.
    h = x @ w1.T
    if x.shape[0] > 1:
        mean = jnp.mean(h, axis=0, keepdims=True)
        var = jnp.mean((h - mean) ** 2, axis=0, keepdims=True)
        h = (h - mean) / jnp.sqrt(var + EPS)
        h = h * gamma[None, :] + beta[None, :]
    h = jnp.maximum(h, 0.0)
    return h @ w2.T


if __name__ == "__main__":
    # Small shapes consistent with the module: batch=8 (>1 so the BatchNorm path runs).
    batch, input_dim, hidden_dim, output_dim = 8, 16, 32, 16

    key = jax.random.PRNGKey(0)
    k_x, k_w1, k_w2 = jax.random.split(key, 3)

    x = jax.random.normal(k_x, (batch, input_dim), dtype=jnp.float32)
    w1 = _xavier_uniform(k_w1, hidden_dim, input_dim)   # mlp_layer1.weight
    w2 = _xavier_uniform(k_w2, output_dim, hidden_dim)  # mlp_layer2.weight
    gamma = jnp.ones((hidden_dim,), dtype=jnp.float32)  # batch_norm.weight
    beta = jnp.zeros((hidden_dim,), dtype=jnp.float32)  # batch_norm.bias

    # One-time parameter preparation (hoisted out of the forward path).
    params = jax.tree_util.tree_map(jax.block_until_ready, prepare_params(w1, w2, gamma, beta))

    out = mlp_forward(x, params)
    out = jax.block_until_ready(out)
    assert out.shape == (batch, output_dim)

    # Tight check against a reference with matching (bf16-matmul) numerics.
    ref_m = _reference_matched(x, w1, w2, gamma, beta)
    assert jnp.allclose(out, ref_m, atol=2e-3, rtol=2e-3), "mismatch vs bf16-matched reference"

    # Loose sanity check against the pure-f32 PyTorch-equivalent forward.
    ref_f = _reference_f32(x, w1, w2, gamma, beta)
    assert jnp.allclose(out, ref_f, atol=1e-1, rtol=1e-1), "mismatch vs f32 reference"

    print("KERNEL_OK")
</pallas_src>

<mosaic_0001>
module attributes {stable_mosaic.version = 11 : i64} {
  func.func @_mlp_kernel(%arg0: memref<8x16xf32, #tpu.memory_space<vmem>>, %arg1: memref<16x128xbf16, #tpu.memory_space<vmem>>, %arg2: memref<128x128xbf16, #tpu.memory_space<vmem>>, %arg3: memref<1x128xf32, #tpu.memory_space<vmem>>, %arg4: memref<1x128xf32, #tpu.memory_space<vmem>>, %arg5: memref<8x128xf32, #tpu.memory_space<vmem>>) attributes {dimension_semantics = [], scalar_prefetch = 0 : i64, scratch_operands = 0 : i64, tpu.core_type = #tpu.core_type<tc>} {
    %c0 = arith.constant 0 : index
    %c0_0 = arith.constant 0 : index
    %0 = vector.load %arg0[%c0, %c0_0] : memref<8x16xf32, #tpu.memory_space<vmem>>, vector<8x16xf32>
    %1 = arith.truncf %0 : vector<8x16xf32> to vector<8x16xbf16>
    %c0_1 = arith.constant 0 : index
    %c0_2 = arith.constant 0 : index
    %2 = vector.load %arg1[%c0_1, %c0_2] : memref<16x128xbf16, #tpu.memory_space<vmem>>, vector<16x128xbf16>
    %cst = arith.constant dense<0.000000e+00> : vector<8x128xf32>
    %3 = tpu.matmul %1, %2, %cst {dimension_numbers = #tpu.dot_dimension_numbers<[1], [0], [0], [1], [0, 0, 1, 1], [], []>} : vector<8x16xbf16>, vector<16x128xbf16>, vector<8x128xf32> -> vector<8x128xf32>
    %cst_3 = arith.constant dense<0.000000e+00> : vector<128xf32>
    %4 = vector.multi_reduction <add>, %3, %cst_3 [0] : vector<8x128xf32> to vector<128xf32>
    %5 = vector.shape_cast %4 : vector<128xf32> to vector<1x128xf32>
    %cst_4 = arith.constant 1.250000e-01 : f32
    %6 = vector.broadcast %cst_4 : f32 to vector<1x128xf32>
    %7 = arith.mulf %5, %6 : vector<1x128xf32>
    %8 = arith.mulf %3, %3 : vector<8x128xf32>
    %cst_5 = arith.constant dense<0.000000e+00> : vector<128xf32>
    %9 = vector.multi_reduction <add>, %8, %cst_5 [0] : vector<8x128xf32> to vector<128xf32>
    %10 = vector.shape_cast %9 : vector<128xf32> to vector<1x128xf32>
    %cst_6 = arith.constant 1.250000e-01 : f32
    %11 = vector.broadcast %cst_6 : f32 to vector<1x128xf32>
    %12 = arith.mulf %10, %11 : vector<1x128xf32>
    %13 = arith.mulf %7, %7 : vector<1x128xf32>
    %14 = arith.subf %12, %13 : vector<1x128xf32>
    %cst_7 = arith.constant 0.000000e+00 : f32
    %15 = vector.broadcast %cst_7 : f32 to vector<1x128xf32>
    %16 = arith.maximumf %14, %15 : vector<1x128xf32>
    %c0_8 = arith.constant 0 : index
    %c0_9 = arith.constant 0 : index
    %17 = vector.load %arg3[%c0_8, %c0_9] : memref<1x128xf32, #tpu.memory_space<vmem>>, vector<1x128xf32>
    %cst_10 = arith.constant 9.99999974E-6 : f32
    %18 = vector.broadcast %cst_10 : f32 to vector<1x128xf32>
    %19 = arith.addf %16, %18 : vector<1x128xf32>
    %20 = math.rsqrt %19 : vector<1x128xf32>
    %21 = arith.mulf %17, %20 : vector<1x128xf32>
    %c0_11 = arith.constant 0 : index
    %c0_12 = arith.constant 0 : index
    %22 = vector.load %arg4[%c0_11, %c0_12] : memref<1x128xf32, #tpu.memory_space<vmem>>, vector<1x128xf32>
    %23 = arith.mulf %7, %21 : vector<1x128xf32>
    %24 = arith.subf %22, %23 : vector<1x128xf32>
    %25 = vector.broadcast %21 : vector<1x128xf32> to vector<8x128xf32>
    %26 = arith.mulf %3, %25 : vector<8x128xf32>
    %27 = vector.broadcast %24 : vector<1x128xf32> to vector<8x128xf32>
    %28 = arith.addf %26, %27 : vector<8x128xf32>
    %cst_13 = arith.constant 0.000000e+00 : f32
    %29 = vector.broadcast %cst_13 : f32 to vector<8x128xf32>
    %30 = arith.maximumf %28, %29 : vector<8x128xf32>
    %31 = arith.truncf %30 : vector<8x128xf32> to vector<8x128xbf16>
    %c0_14 = arith.constant 0 : index
    %c0_15 = arith.constant 0 : index
    %32 = vector.load %arg2[%c0_14, %c0_15] : memref<128x128xbf16, #tpu.memory_space<vmem>>, vector<128x128xbf16>
    %cst_16 = arith.constant dense<0.000000e+00> : vector<8x128xf32>
    %33 = tpu.matmul %31, %32, %cst_16 {dimension_numbers = #tpu.dot_dimension_numbers<[1], [0], [0], [1], [0, 0, 1, 1], [], []>} : vector<8x128xbf16>, vector<128x128xbf16>, vector<8x128xf32> -> vector<8x128xf32>
    %c0_17 = arith.constant 0 : index
    %c0_18 = arith.constant 0 : index
    %34 = vector.load %arg5[%c0_17, %c0_18] : memref<8x128xf32, #tpu.memory_space<vmem>>, vector<8x128xf32>
    tpu.vector_store %arg5[%c0_17, %c0_18], %33 {strides = array<i32>} : memref<8x128xf32, #tpu.memory_space<vmem>>, vector<8x128xf32>,
    return
  }
}

</mosaic_0001>

<bundles_post_ra>
// kernel: tpu_custom_call.1
= control target key start
LH: loop header
LB: loop body
LE: loop exit
PB: predicated region body
PF: predicated region fallthrough
CT: control target
= control target key end

     0   :  { %10 = vsyncpa [#allocation3], 0  ;;  %s485_s0 = inlined_call_operand.hbm [shape: f32[8,16], index: 0, kind: input, shape index: {}]   ;;  %s486_s1 = inlined_call_operand.hbm [shape: bf16[16,128], index: 1, kind: input, shape index: {}]   ;;  %s487_s2 = inlined_call_operand.hbm [shape: bf16[128,128], index: 2, kind: input, shape index: {}]   ;;  %s488_s3 = inlined_call_operand.vmem [shape: f32[1,128], index: 3, kind: input, shape index: {}]   ;;  %s489_s4 = inlined_call_operand.vmem [shape: f32[1,128], index: 4, kind: input, shape index: {}]   ;;  %s490_s5 = inlined_call_operand.hbm [shape: f32[8,128], index: 5, kind: output, shape index: {}]  }
   0x1   :  { %11 = vsyncpa [#allocation6], 0 }
   0x2   :  { %12 = vsyncpa [#allocation4], 0  ;;  %s429_s18 = smov [#allocation5]  }
   0x3   :  { %s28_s19 = sshll.u32 %s429_s18, 4  ;;  %s29_s19 = int_to_ptr.vmem [resolvable:$true] %s28_s19 }
   0x4   :  { %s351_s20 = scalar_lea.vmem %s29_s19, 128  ;;  %p356_p1 = scmp.lt.s32.totalorder %s29_s19, %s29_s19 }
   0x5   :  { %p352_p0 = scmp.ne.s32.totalorder %s29_s19, %s351_s20  ;;  %p357_p2 = scmp.lt.s32.totalorder %s351_s20, %s351_s20 }
   0x7   :  { %p358_p3 = por %p357_p2, %p356_p1 }
   0x9   :  { %p359_p4 = pnand %p358_p3, %p352_p0 }
   0xb   :  { %362 = shalt.err (!%p359_p4)
}
   0xc   :  { %s430_s21 = smov 64   ;;  %s431_s22 = smov 4  }
   0xd   :  { %34 = dma.hbm_to_vmem [thread:$0]  %s486_s1, 128, %s29_s19, [#allocation6], %s430_s21, %s430_s21, %s431_s22  }
   0xe   :  { %s432_s25 = smov [#allocation2]   ;;  %s433_s27 = smov [#allocation7]  }
   0xf   :  { %s19_s26 = sshll.u32 %s432_s25, 4  ;;  %s40_s28 = sshll.u32 %s433_s27, 4  ;;  %s20_s26 = int_to_ptr.vmem [resolvable:$true] %s19_s26  ;;  %s41_s28 = int_to_ptr.vmem [resolvable:$true] %s40_s28 }
  0x10   :  { %s371_s29 = scalar_lea.vmem %s20_s26, 128  ;;  %p376_p6 = scmp.lt.s32.totalorder %s20_s26, %s20_s26 }
  0x11   :  { %p372_p5 = scmp.ne.s32.totalorder %s20_s26, %s371_s29  ;;  %p377_p7 = scmp.lt.s32.totalorder %s371_s29, %s371_s29 }
  0x13   :  { %p378_p8 = por %p377_p7, %p376_p6 }
  0x15   :  { %p379_p9 = pnand %p378_p8, %p372_p5 }
  0x17   :  { %382 = shalt.err (!%p379_p9)
}
  0x18   :  { %22 = dma.hbm_to_vmem [thread:$0]  %s485_s0, 128, %s20_s26, [#allocation3]  }
  0x19   :  { %s391_s7 = scalar_lea.vmem %s41_s28, 1024  ;;  %p396_p11 = scmp.lt.s32.totalorder %s41_s28, %s41_s28 }
  0x1a   :  { %p392_p10 = scmp.ne.s32.totalorder %s41_s28, %s391_s7  ;;  %p397_p12 = scmp.lt.s32.totalorder %s391_s7, %s391_s7 }
  0x1c   :  { %p398_p13 = por %p397_p12, %p396_p11 }
  0x1e   :  { %p399_p0 = pnand %p398_p13, %p392_p10 }
  0x20   :  { %402 = shalt.err (!%p399_p0)
}
  0x21   :  { %46 = dma.hbm_to_vmem [thread:$0]  %s487_s2, 1024, %s41_s28, [#allocation6], %s430_s21, %s430_s21, %s431_s22  }
  0x22   :  { %423 = dma.done.wait [#allocation3], 128  }
  0x23   :  { %424 = vsyncadd [#allocation3], 4294967168 }
  0x24   :  { %425 = dma.done.wait [#allocation6], 1152  }
  0x25   :  { %426 = vsyncadd [#allocation6], 4294966144  ;;  %v434_v0 = vmov 0.0   ;;  %vm435_vm0 = vmmov 0   ;;  %v332_v1 = vld [vmem:[#allocation5] sm:$0xff]   ;;  %v61_v2 = vld [vmem:[#allocation2] sm:$0xff]  ;;  %v141_v35 = vlaneseq }
  0x26   :  { %298 = vmatprep.subr.bf16.mxu0 %v434_v0  ;;  %300 = vmatprep.mubr.msk.bf16.mxu0 %vm435_vm0, %v434_v0  ;;  %vm71_vm1 = vcmask 130048   ;;  %v62_v3 = vpack.c.bf16 %v61_v2, %v61_v2  ;;  %v333_v4 = vld [vmem:[#allocation7 + $0x38] sm:$0xff]   ;;  %v334_v5 = vld [vmem:[#allocation7 + $0x30] sm:$0xff]   ;;  %v335_v6 = vld [vmem:[#allocation7 + $0x28] sm:$0xff]   ;;  %s436_s11 = smov [#allocation8]  }
  0x27   :  { %304 = vmatprep.subr.bf16.mxu1 %v434_v0  ;;  %320 = vmatprep.mubr.msk.bf16.mxu1 %vm435_vm0, %v434_v0  ;;  %v336_v7 = vld [vmem:[#allocation7 + $0x20] sm:$0xff]   ;;  %v337_v8 = vld [vmem:[#allocation7 + $0x18] sm:$0xff]   ;;  %v338_v9 = vld [vmem:[#allocation7 + $0x10] sm:$0xff]   ;;  %v142_v36 = vshrl.u32 %v141_v35, 7  ;;  %s267_s12 = sshll.u32 %s436_s11, 4  ;;  %s268_s12 = int_to_ptr.vmem [resolvable:$true] %s267_s12 }
  0x28   :  { %299 = vmatpush3.bf16.msra.mxu0 %v332_v1  ;;  %305 = vmatpush3.bf16.msra.mxu1 %v333_v4  ;;  %v339_v10 = vld [vmem:[#allocation7 + $0x8] sm:$0xff]   ;;  %v340_v11 = vld [vmem:[#allocation7] sm:$0xff]   ;;  %v133_v37 = vld [vmem:[%s488_s3] sm:$0x1]  ;;  %s403_s3 = scalar_lea.vmem %s268_s12, 128  ;;  %p408_p2 = scmp.lt.s32.totalorder %s268_s12, %s268_s12 }
  0x29   :  { %306 = vmatprep.subr.bf16.mxu1 %v434_v0  ;;  %v143_v38 = vsub.s32 0, %v142_v36  ;;  %v137_v41 = vld [vmem:[%s489_s4] sm:$0x1]  ;;  %p404_p1 = scmp.ne.s32.totalorder %s268_s12, %s403_s3  ;;  %p409_p3 = scmp.lt.s32.totalorder %s403_s3, %s403_s3 }
  0x2b   :  { %301 = vmatmul.mubr.msk.bf16.vlgmr.msra.gmra.mxu0 %vm71_vm1, %v62_v3  ;;  %p410_p4 = por %p409_p3, %p408_p2 }
  0x2c   :  { %307 = vmatpush3.bf16.msra.mxu1 %v334_v5 }
  0x2d   :  { %308 = vmatprep.subr.bf16.mxu1 %v434_v0  ;;  %p411_p5 = pnand %p410_p4, %p404_p1 }
  0x30   :  { %309 = vmatpush3.bf16.msra.mxu1 %v335_v6 }
  0x31   :  { %310 = vmatprep.subr.bf16.mxu1 %v434_v0 }
  0x34   :  { %311 = vmatpush3.bf16.msra.mxu1 %v336_v7 }
  0x35   :  { %312 = vmatprep.subr.bf16.mxu1 %v434_v0 }
  0x38   :  { %313 = vmatpush3.bf16.msra.mxu1 %v337_v8 }
  0x39   :  { %314 = vmatprep.subr.bf16.mxu1 %v434_v0 }
  0x3c   :  { %315 = vmatpush3.bf16.msra.mxu1 %v338_v9 }
  0x3d   :  { %316 = vmatprep.subr.bf16.mxu1 %v434_v0 }
  0x40   :  { %317 = vmatpush3.bf16.msra.mxu1 %v339_v10 }
  0x41   :  { %318 = vmatprep.subr.bf16.mxu1 %v434_v0 }
  0x44   :  { %319 = vmatpush3.bf16.msra.mxu1 %v340_v11 }
  0xeb   :  { %v109_v12 = vpop.f32.mrf.mxu0 }
  0xec   :  { %v115_v13 = vrot.slane %v109_v12, 4  ;;  %v122_v14 = vmul.f32 %v109_v12, %v109_v12 }
  0xed   :  { %v302_v15 = vpop.f32.mrf.mxu0 }
  0xee   :  { %v116_v16 = vadd.f32 %v115_v13, %v109_v12  ;;  %v123_v17 = vrot.slane %v122_v14, 4 }
  0xef   :  { %v112_v18 = vpop.f32.mrf.mxu0 }
  0xf0   :  { %v117_v19 = vrot.slane %v116_v16, 2  ;;  %v124_v20 = vadd.f32 %v123_v17, %v122_v14 }
  0xf1   :  { %v303_v21 = vpop.f32.mrf.mxu0 }
  0xf2   :  { %v118_v22 = vadd.f32 %v117_v19, %v116_v16  ;;  %v125_v23 = vrot.slane %v124_v20, 2 }
  0xf4   :  { %v119_v24 = vrot.slane %v118_v22, 1  ;;  %v126_v25 = vadd.f32 %v125_v23, %v124_v20 }
  0xf6   :  { %v120_v26 = vadd.f32 %v119_v24, %v118_v22  ;;  %v127_v27 = vrot.slane %v126_v25, 1 }
  0xf8   :  { %v121_v28 = vmul.f32 0.125, %v120_v26  ;;  %v128_v29 = vadd.f32 %v127_v27, %v126_v25 }
  0xfa   :  { %v129_v30 = vmul.f32 0.125, %v128_v29  ;;  %v130_v31 = vmul.f32 %v121_v28, %v121_v28 }
  0xfc   :  { %v131_v32 = vsub.f32 %v129_v30, %v130_v31 }
  0xfe   :  { %v132_v33 = vmax.f32 %v131_v32, 0.0 }
 0x100   :  { %v134_v34 = vadd.f32 1e-05, %v132_v33 }
 0x102   :  { %341 = vrsqrt.f32 %v134_v34 }
 0x10f   :  { %v342_v39 = vpop.eup %341 }
 0x110   :  { %v136_v40 = vmul.f32 %v342_v39, %v133_v37 }
 0x112   :  { %v144_v42 = vrot.slane %v136_v40, %v143_v38  ;;  %v138_v43 = vmul.f32 %v136_v40, %v121_v28 }
 0x114   :  { %v139_v44 = vsub.f32 %v137_v41, %v138_v43  ;;  %v146_v45 = vmul.f32 %v144_v42, %v109_v12 }
 0x116   :  { %v151_v46 = vrot.slane %v139_v44, %v143_v38 }
 0x118   :  { %v153_v47 = vadd.f32 %v151_v46, %v146_v45 }
 0x11a   :  { %v154_v48 = vmax.f32 %v153_v47, 0.0 }
 0x11c   :  { %v155_v49 = vpack.c.bf16 %v154_v48, %v154_v48 }
 0x11e   :  { %321 = vmatmul.mubr.bf16.vlgmr.msra.gmra.mxu1 %v155_v49 }
 0x1de   :  { %v254_v50 = vpop.f32.mrf.mxu1 }
 0x1df   :  { %260 = vst [vmem:[#allocation8] sm:$0xff] %v254_v50 }
 0x1e0   :  { %v322_v51 = vpop.f32.mrf.mxu1 }
 0x1e1   :  { %414 = shalt.err (!%p411_p5)
}
 0x1e2   :  { %270 = dma.vmem_to_hbm [thread:$0]  %s268_s12, 128, %s490_s5, [#allocation4]   ;;  %v257_v52 = vpop.f32.mrf.mxu1 }
 0x1e4   :  { %v323_v53 = vpop.f32.mrf.mxu1 }
 0x1e5   :  { %427 = dma.done.wait [#allocation4], 128  }
 0x1e6   :  { %428 = vsyncadd [#allocation4], 4294967168 }
 0x1e7   :  { %274 = vsyncpa [#allocation3], 1 }
 0x1e8   :  { %275 = vsyncpa [#allocation6], 1 }
 0x1e9   :  { %276 = vsyncpa [#allocation4], 1 }

</bundles_post_ra>
